<compile_context>
chip_gen: v5e
topology: v5e:2x2
jax: 0.10.0
libtpu: 0.0.40
codegen_flags: <defaults>
</compile_context>

<pallas_src>
import functools

import jax
import jax.numpy as jnp
from jax.experimental import pallas as pl
from jax.experimental.pallas import tpu as pltpu

_LANE = 128
_VMEM_LIMIT = 32 * 1024 * 1024      # > v5e's 16 MiB default, <= physical VMEM everywhere
_STEP_BYTES = 2 * 1024 * 1024       # ~2 MiB of output per grid step (amortizes step overhead)


# ----------------------------------------------------------------------------
# Trace-time planning helpers
# ----------------------------------------------------------------------------
def _tensorcores_per_chip():
    """How many TensorCores share the Pallas grid (v7x / megacore chips: 2)."""
    try:
        kind = (getattr(jax.devices()[0], "device_kind", "") or "").lower()
        if any(t in kind for t in ("v7", "v5p", "v4", "v3")):
            return 2
    except Exception:
        pass
    return 1


def _round_down(x, m):
    return max(m, (x // m) * m)


def _plan_1x1(B, C, N, E, n_tc):
    """Pick (batch block bb, row tile tn) for the fused 1x1 path.

    Targets ~_STEP_BYTES of output per step. bb always divides B (no ragged
    batch block); ragged N tails are handled by Pallas masked writeback.
    """
    row_budget = max(_LANE, _STEP_BYTES // (4 * max(E, 1)))
    if N >= row_budget:
        bb = 1
        tn = min(N, 2048, _round_down(row_budget, _LANE))
        # Two TensorCores + single-image call: keep >= 2 steps on the N axis.
        if n_tc >= 2 and B == 1 and N > 2 * _LANE and pl.cdiv(N, tn) < 2:
            tn = _round_down(pl.cdiv(N, 2), _LANE)
    else:
        tn = N
        bb_cap = min(8, max(1, row_budget // max(N, 1)))   # short static unroll
        if n_tc >= 2 and B >= 2:
            bb_cap = min(bb_cap, max(1, B // 2))           # keep >= 2 batch steps
        bb = 1
        for d in range(bb_cap, 0, -1):
            if B % d == 0:
                bb = d
                break
    return bb, tn


def _choose_tk(K):
    """Reduction tile: full K when small, else a divisor of K (a ragged block on
    the contraction axis would feed garbage into the accumulator)."""
    if K <= 1024:
        return K
    for d in range(1024, 7, -1):
        if K % d == 0 and d % 8 == 0:
            return d
    for d in range(1024, 0, -1):
        if K % d == 0:
            return d
    return K


def _plan_mm(M, K, E, n_tc):
    tk = _choose_tk(K)
    tm_budget = max(_LANE, _STEP_BYTES // (4 * max(tk, E)))
    if M <= 2048 and M <= tm_budget:
        tm = M
    else:
        tm = _round_down(min(2048, tm_budget, M), _LANE)
    if n_tc >= 2 and M > 2 * _LANE and pl.cdiv(M, tm) < 2:
        tm = _round_down(pl.cdiv(M, 2), _LANE)
    return tm, tk


# ----------------------------------------------------------------------------
# Fused path: ph == pw == 1  (the dynamically-clamped case for small images).
# out[b, n, e] = sum_c x[b, c, n] * w[c, e] + bias[e]
# ----------------------------------------------------------------------------
def _proj_1x1_kernel(x_ref, w_ref, b_ref, o_ref):
    # x_ref: (bb, C, tn)  channels on sublanes, pixels lane-dense
    # w_ref: (C, E), b_ref: (1, E), o_ref: (bb, tn, E)
    w = w_ref[...]
    bias = b_ref[...].astype(jnp.float32)
    for i in range(x_ref.shape[0]):            # static unroll over the batch block
        acc = jax.lax.dot_general(
            x_ref[i], w,
            dimension_numbers=(((0,), (0,)), ((), ())),   # contract over C
            preferred_element_type=jnp.float32)
        o_ref[i] = (acc + bias).astype(o_ref.dtype)


def _proj_1x1(x_bcn, w_ce, bias, bb, tn, out_dtype):
    B, C, N = x_bcn.shape
    E = w_ce.shape[1]
    grid = (B // bb, pl.cdiv(N, tn))           # bb divides B; ragged N is masked
    return pl.pallas_call(
        _proj_1x1_kernel,
        out_shape=jax.ShapeDtypeStruct((B, N, E), out_dtype),
        grid=grid,
        in_specs=[
            pl.BlockSpec((bb, C, tn), lambda b, n: (b, 0, n)),   # input slab
            pl.BlockSpec((C, E), lambda b, n: (0, 0)),           # full weight
            pl.BlockSpec((1, E), lambda b, n: (0, 0)),           # bias row
        ],
        out_specs=pl.BlockSpec((bb, tn, E), lambda b, n: (b, n, 0)),
        compiler_params=pltpu.CompilerParams(
            dimension_semantics=("parallel", "parallel"),
            vmem_limit_bytes=_VMEM_LIMIT),
    )(x_bcn, w_ce, bias.reshape(1, E))


# ----------------------------------------------------------------------------
# General path: ph > 1 or pw > 1 — im2col in the wrapper (see TODO), K-tiled
# matmul with an f32 accumulator in Pallas. Patches are (K, M) so the kernel
# contracts over sublanes and keeps the M pixels lane-dense.
# ----------------------------------------------------------------------------
def _proj_mm_kernel(p_ref, w_ref, b_ref, o_ref, acc_ref):
    # p_ref: (tk, tm), w_ref: (tk, E), b_ref: (1, E), o_ref: (tm, E), acc: (tm, E) f32
    @pl.when(pl.program_id(1) == 0)
    def _():
        acc_ref[...] = jnp.zeros_like(acc_ref)

    acc_ref[...] += jax.lax.dot_general(
        p_ref[...], w_ref[...],
        dimension_numbers=(((0,), (0,)), ((), ())),        # contract over K chunk
        preferred_element_type=jnp.float32)

    @pl.when(pl.program_id(1) == pl.num_programs(1) - 1)
    def _():
        o_ref[...] = (acc_ref[...] + b_ref[...].astype(jnp.float32)).astype(o_ref.dtype)


def _proj_mm(patches_km, w_ke, bias, tm, tk, out_dtype):
    K, M = patches_km.shape
    E = w_ke.shape[1]
    grid = (pl.cdiv(M, tm), K // tk)           # reduction axis last ("arbitrary")
    return pl.pallas_call(
        _proj_mm_kernel,
        out_shape=jax.ShapeDtypeStruct((M, E), out_dtype),
        grid=grid,
        in_specs=[
            pl.BlockSpec((tk, tm), lambda i, k: (k, i)),
            pl.BlockSpec((tk, E), lambda i, k: (k, 0)),
            pl.BlockSpec((1, E), lambda i, k: (0, 0)),
        ],
        out_specs=pl.BlockSpec((tm, E), lambda i, k: (i, 0)),
        scratch_shapes=[pltpu.VMEM((tm, E), jnp.float32)],
        compiler_params=pltpu.CompilerParams(
            dimension_semantics=("parallel", "arbitrary"),
            vmem_limit_bytes=_VMEM_LIMIT),
    )(patches_km, w_ke, bias.reshape(1, E))


# ----------------------------------------------------------------------------
# Forward
# ----------------------------------------------------------------------------
@functools.partial(jax.jit, static_argnames=("out_dtype",))
def patch_embedding1_forward(x, weight, bias, out_dtype=None):
    """x: (B,C,H,W), weight: (E,C,ph,pw) (PyTorch OIHW), bias: (E,)
    returns (B, Gh*Gw, E). out_dtype=jnp.bfloat16 halves output HBM traffic
    (accumulation stays f32); default keeps the input dtype."""
    B, C, H, W = x.shape
    E, Cw, ph, pw = weight.shape
    assert Cw == C
    out_dtype = x.dtype if out_dtype is None else out_dtype
    n_tc = _tensorcores_per_chip()
    Gh, Gw = H // ph, W // pw
    num_patches = Gh * Gw

    if ph == 1 and pw == 1:
        # 1x1 strided conv == per-pixel linear projection over channels.
        # (B,C,H,W) -> (B,C,N) is free; the kernel reads the input exactly once.
        N = H * W
        x_bcn = x.reshape(B, C, N)
        w_ce = weight.reshape(E, C).T                    # (C, E)
        bb, tn = _plan_1x1(B, C, N, E, n_tc)
        return _proj_1x1(x_bcn, w_ce, bias, bb, tn, out_dtype)   # (B, N, E)

    # TODO(synk): fuse this strided (C, ph, pw) patch gather into the kernel
    # (tap grid axis + strided DMA) to drop the extra XLA HBM pass; kept in XLA
    # here for lowering robustness.
    if (H % ph) or (W % pw):
        x = x[:, :, :Gh * ph, :Gw * pw]                  # VALID-stride tail drop
    K = C * ph * pw
    M = B * num_patches
    xp = x.reshape(B, C, Gh, ph, Gw, pw)
    # (c,kh,kw)-major / pixel-minor layout: contraction on sublanes, pixels on lanes.
    patches_km = jnp.transpose(xp, (1, 3, 5, 0, 2, 4)).reshape(K, M)
    w_ke = weight.reshape(E, K).T                        # (K, E), matches OIHW flatten
    tm, tk = _plan_mm(M, K, E, n_tc)
    out = _proj_mm(patches_km, w_ke, bias, tm, tk, out_dtype)    # (M, E)
    return out.reshape(B, num_patches, E)


# ----------------------------------------------------------------------------
# Helpers / reference / test
# ----------------------------------------------------------------------------
def _clamped_patch_size(H, W):
    ph, pw = H // 32, W // 32
    return max(ph, 1), max(pw, 1)


def _reference_forward(x, weight, bias):
    E, C, ph, pw = weight.shape
    y = jax.lax.conv_general_dilated(
        x, weight, window_strides=(ph, pw), padding="VALID",
        dimension_numbers=("NCHW", "OIHW", "NCHW"),
        precision=jax.lax.Precision.HIGHEST)
    y = y + bias.reshape(1, E, 1, 1)
    B = x.shape[0]
    return jnp.transpose(y.reshape(B, E, -1), (0, 2, 1))


if __name__ == "__main__":
    key = jax.random.PRNGKey(0)
    k1, k2, k3, k4, k5, k6 = jax.random.split(key, 6)

    def make_params(k, C, E, ph, pw):
        kw_, kb_ = jax.random.split(k)
        fan_in = C * ph * pw
        bound = 1.0 / (fan_in ** 0.5)
        w = jax.random.uniform(kw_, (E, C, ph, pw), minval=-bound,
                               maxval=bound, dtype=jnp.float32)
        b = jax.random.uniform(kb_, (E,), minval=-bound, maxval=bound,
                               dtype=jnp.float32)
        return w, b

    E = 128

    # Case 1: H=W=16 -> patch_size clamps to (1,1)  => fused 1x1 path.
    B, C, H, W = 2, 4, 16, 16
    ph, pw = _clamped_patch_size(H, W)
    x = jax.random.normal(k1, (B, C, H, W), dtype=jnp.float32)
    wgt, b = make_params(k2, C, E, ph, pw)
    out = jax.block_until_ready(patch_embedding1_forward(x, wgt, b))
    ref = jax.block_until_ready(_reference_forward(x, wgt, b))
    assert out.shape == (B, (H // ph) * (W // pw), E), out.shape
    assert jnp.allclose(out, ref, atol=1e-4, rtol=1e-4), float(
        jnp.max(jnp.abs(out - ref)))

    # Case 2: H=W=64 -> patch_size (2,2)  => general K-tiled matmul path.
    B2, C2, H2, W2 = 2, 4, 64, 64
    ph2, pw2 = _clamped_patch_size(H2, W2)
    x2 = jax.random.normal(k3, (B2, C2, H2, W2), dtype=jnp.float32)
    wgt2, b2 = make_params(k4, C2, E, ph2, pw2)
    out2 = jax.block_until_ready(patch_embedding1_forward(x2, wgt2, b2))
    ref2 = jax.block_until_ready(_reference_forward(x2, wgt2, b2))
    assert out2.shape == (B2, (H2 // ph2) * (W2 // pw2), E), out2.shape
    assert jnp.allclose(out2, ref2, atol=1e-4, rtol=1e-4), float(
        jnp.max(jnp.abs(out2 - ref2)))

    # Case 3: larger batch, small image -> exercises the multi-batch block (bb>1).
    B3, C3, H3, W3 = 8, 3, 16, 16
    ph3, pw3 = _clamped_patch_size(H3, W3)
    x3 = jax.random.normal(k5, (B3, C3, H3, W3), dtype=jnp.float32)
    wgt3, b3 = make_params(k6, C3, E, ph3, pw3)
    out3 = jax.block_until_ready(patch_embedding1_forward(x3, wgt3, b3))
    ref3 = jax.block_until_ready(_reference_forward(x3, wgt3, b3))
    assert out3.shape == (B3, (H3 // ph3) * (W3 // pw3), E), out3.shape
    assert jnp.allclose(out3, ref3, atol=1e-4, rtol=1e-4), float(
        jnp.max(jnp.abs(out3 - ref3)))

    print("KERNEL_OK")
</pallas_src>

<mosaic_0001>
module attributes {stable_mosaic.version = 11 : i64} {
  func.func @_proj_1x1_kernel(%arg0: i32, %arg1: i32, %arg2: memref<2x4x256xf32, #tpu.memory_space<vmem>>, %arg3: memref<4x128xf32, #tpu.memory_space<vmem>>, %arg4: memref<1x128xf32, #tpu.memory_space<vmem>>, %arg5: memref<2x256x128xf32, #tpu.memory_space<vmem>>) attributes {dimension_semantics = [#tpu.dimension_semantics<parallel>, #tpu.dimension_semantics<parallel>], iteration_bounds = array<i64: 1, 1>, scalar_prefetch = 0 : i64, scratch_operands = 0 : i64, tpu.core_type = #tpu.core_type<tc>, window_params = [{transform_indices = @transform_0, window_bounds = array<i64: 2, 4, 256>}, {pipeline_mode = #tpu.pipeline_mode<synchronous>, transform_indices = @transform_1, window_bounds = array<i64: 4, 128>}, {pipeline_mode = #tpu.pipeline_mode<synchronous>, transform_indices = @transform_2, window_bounds = array<i64: 1, 128>}, {transform_indices = @transform_3, window_bounds = array<i64: 2, 256, 128>}]} {
    %c0 = arith.constant 0 : index
    %c0_0 = arith.constant 0 : index
    %0 = vector.load %arg3[%c0, %c0_0] : memref<4x128xf32, #tpu.memory_space<vmem>>, vector<4x128xf32>
    %c0_1 = arith.constant 0 : index
    %c0_2 = arith.constant 0 : index
    %1 = vector.load %arg4[%c0_1, %c0_2] : memref<1x128xf32, #tpu.memory_space<vmem>>, vector<1x128xf32>
    %c0_3 = arith.constant 0 : index
    %c0_4 = arith.constant 0 : index
    %c0_5 = arith.constant 0 : index
    %2 = vector.load %arg2[%c0_3, %c0_4, %c0_5] : memref<2x4x256xf32, #tpu.memory_space<vmem>>, vector<1x4x256xf32>
    %3 = vector.shape_cast %2 : vector<1x4x256xf32> to vector<4x256xf32>
    %cst = arith.constant dense<0.000000e+00> : vector<256x128xf32>
    %4 = tpu.matmul %3, %0, %cst {dimension_numbers = #tpu.dot_dimension_numbers<[0], [0], [1], [1], [0, 1, 1, 1], [], []>} : vector<4x256xf32>, vector<4x128xf32>, vector<256x128xf32> -> vector<256x128xf32>
    %5 = vector.broadcast %1 : vector<1x128xf32> to vector<256x128xf32>
    %6 = arith.addf %4, %5 : vector<256x128xf32>
    %c0_6 = arith.constant 0 : index
    %c0_7 = arith.constant 0 : index
    %c0_8 = arith.constant 0 : index
    %7 = vector.load %arg5[%c0_6, %c0_7, %c0_8] : memref<2x256x128xf32, #tpu.memory_space<vmem>>, vector<1x256x128xf32>
    %8 = vector.shape_cast %7 : vector<1x256x128xf32> to vector<256x128xf32>
    %9 = vector.shape_cast %6 : vector<256x128xf32> to vector<1x256x128xf32>
    tpu.vector_store %arg5[%c0_6, %c0_7, %c0_8], %9 {strides = array<i32>} : memref<2x256x128xf32, #tpu.memory_space<vmem>>, vector<1x256x128xf32>,
    %c1 = arith.constant 1 : index
    %c0_9 = arith.constant 0 : index
    %c0_10 = arith.constant 0 : index
    %10 = vector.load %arg2[%c1, %c0_9, %c0_10] : memref<2x4x256xf32, #tpu.memory_space<vmem>>, vector<1x4x256xf32>
    %11 = vector.shape_cast %10 : vector<1x4x256xf32> to vector<4x256xf32>
    %cst_11 = arith.constant dense<0.000000e+00> : vector<256x128xf32>
    %12 = tpu.matmul %11, %0, %cst_11 {dimension_numbers = #tpu.dot_dimension_numbers<[0], [0], [1], [1], [0, 1, 1, 1], [], []>} : vector<4x256xf32>, vector<4x128xf32>, vector<256x128xf32> -> vector<256x128xf32>
    %13 = vector.broadcast %1 : vector<1x128xf32> to vector<256x128xf32>
    %14 = arith.addf %12, %13 : vector<256x128xf32>
    %c1_12 = arith.constant 1 : index
    %c0_13 = arith.constant 0 : index
    %c0_14 = arith.constant 0 : index
    %15 = vector.load %arg5[%c1_12, %c0_13, %c0_14] : memref<2x256x128xf32, #tpu.memory_space<vmem>>, vector<1x256x128xf32>
    %16 = vector.shape_cast %15 : vector<1x256x128xf32> to vector<256x128xf32>
    %17 = vector.shape_cast %14 : vector<256x128xf32> to vector<1x256x128xf32>
    tpu.vector_store %arg5[%c1_12, %c0_13, %c0_14], %17 {strides = array<i32>} : memref<2x256x128xf32, #tpu.memory_space<vmem>>, vector<1x256x128xf32>,
    return
  }
  func.func @transform_0(%arg0: i32, %arg1: i32) -> (i32, i32, i32) {
    %c0_i32 = arith.constant 0 : i32
    %c0_i32_0 = arith.constant 0 : i32
    return %arg0, %c0_i32, %arg1 : i32, i32, i32
  }
  func.func @transform_1(%arg0: i32, %arg1: i32) -> (i32, i32) {
    %c0_i32 = arith.constant 0 : i32
    %c0_i32_0 = arith.constant 0 : i32
    %c0_i32_1 = arith.constant 0 : i32
    return %c0_i32, %c0_i32_0 : i32, i32
  }
  func.func @transform_2(%arg0: i32, %arg1: i32) -> (i32, i32) {
    %c0_i32 = arith.constant 0 : i32
    %c0_i32_0 = arith.constant 0 : i32
    %c0_i32_1 = arith.constant 0 : i32
    return %c0_i32, %c0_i32_0 : i32, i32
  }
  func.func @transform_3(%arg0: i32, %arg1: i32) -> (i32, i32, i32) {
    %c0_i32 = arith.constant 0 : i32
    %c0_i32_0 = arith.constant 0 : i32
    return %arg0, %arg1, %c0_i32 : i32, i32, i32
  }
}

</mosaic_0001>

<bundles_post_ra>
// kernel: patch_embedding1_forward.1
= control target key start
LH: loop header
LB: loop body
LE: loop exit
PB: predicated region body
PF: predicated region fallthrough
CT: control target
= control target key end

     0   :  { %s937_s0 = inlined_call_operand.vmem [shape: f32[2,4,256], index: 0, kind: input, shape index: {}]   ;;  %s938_s1 = inlined_call_operand.vmem [shape: f32[4,128], index: 1, kind: input, shape index: {}]   ;;  %s939_s2 = inlined_call_operand.vmem [shape: f32[1,128], index: 2, kind: input, shape index: {}]   ;;  %s940_s3 = inlined_call_operand.hbm [shape: f32[2,256,128], index: 3, kind: output, shape index: {}]  }
   0x1   :  { %v17_v0 = vld [vmem:[%s937_s0] sm:$0xff] }
   0x2   :  { %22 = vst [vmem:[#allocation1] ss:$2 sm:$0xff] %v17_v0 }
   0x3   :  { %8 = vsyncpa [#allocation3], 0  ;;  %v702_v1 = vld [vmem:[%s937_s0 + $0x8] sm:$0xff]  ;;  %v15_v6 = vld [vmem:[%s938_s1] sm:$0xf]  ;;  %vm188_vm0 = vcmask 1043456  }
   0x4   :  { %736 = vmatpush.msk.msra.mxu2 %vm188_vm0, %v15_v6  ;;  %669 = vmatpush.msk.msra.mxu0 %vm188_vm0, %v15_v6  ;;  %vm91_vm1 = vcmask 31744   ;;  %v836_v39 = vld [vmem:[%s939_s2] ss:$0 sm:$0xff]  ;;  %s769_s2 = smov [#allocation2]   ;;  %s657_s21 = sshll.u32 %s940_s3, 4  ;;  %s658_s21 = int_to_ptr.hbm [resolvable:$true] %s657_s21 }
   0x5   :  { %737 = vmatpush.msk.msra.mxu3 %vm188_vm0, %v15_v6  ;;  %703 = vmatpush.msk.msra.mxu1 %vm188_vm0, %v15_v6  ;;  %s655_s18 = sshll.u32 %s769_s2, 4  ;;  %s770_s22 = smov 128   ;;  %s656_s18 = int_to_ptr.vmem [resolvable:$true] %s655_s18 }
   0x6   :  { %s771_s23 = smov 8  }
   0x9   :  { %v24_v2 = vld.sshfl [vmem:[#allocation1 + $0x8] sm:$0xff pattern:$0x75316420]  ;;  %v23_v3 = vld.sshfl [vmem:[#allocation1] sm:$0xff pattern:$0x75316420] }
   0xa   :  { %59 = vxpose.xlu0.b32.start.end [1/1] (short) %v24_v2, 128  ;;  %27 = vxpose.xlu1.b32.start.end [1/1] (short) %v23_v3, 128  ;;  %340 = vst [vmem:[#allocation1] ss:$2 sm:$0xff] %v702_v1 }
  0x11   :  { %v342_v4 = vld.sshfl [vmem:[#allocation1 + $0x8] sm:$0xff pattern:$0x75316420]  ;;  %v341_v5 = vld.sshfl [vmem:[#allocation1] sm:$0xff pattern:$0x75316420] }
  0x8a   :  { %377 = vxpose.xlu0.b32.start.end [1/1] (short) %v342_v4, 128  ;;  %345 = vxpose.xlu1.b32.start.end [1/1] (short) %v341_v5, 128 }
  0xae   :  { %v75_v7 = vpop.trf.xlu0  ;;  %v43_v8 = vpop.trf.xlu1 }
  0xaf   :  { %686 = vmatmul.msk.f32.vlgmr.msra.gmra.mxu2 %vm91_vm1, %v75_v7  ;;  %670 = vmatmul.msk.f32.vlgmr.msra.gmra.mxu0 %vm91_vm1, %v43_v8 }
  0xb6   :  { %v76_v9 = vpop.trf.xlu0  ;;  %v44_v10 = vpop.trf.xlu1 }
  0xb7   :  { %687 = vmatmul.msk.f32.gmra.mxu2 %vm91_vm1, %v76_v9  ;;  %671 = vmatmul.msk.f32.gmra.mxu0 %vm91_vm1, %v44_v10 }
  0xbe   :  { %v77_v11 = vpop.trf.xlu0  ;;  %v45_v12 = vpop.trf.xlu1 }
  0xbf   :  { %688 = vmatmul.msk.f32.gmra.mxu2 %vm91_vm1, %v77_v11  ;;  %672 = vmatmul.msk.f32.gmra.mxu0 %vm91_vm1, %v45_v12 }
  0xc6   :  { %v78_v13 = vpop.trf.xlu0  ;;  %v46_v14 = vpop.trf.xlu1 }
  0xc7   :  { %689 = vmatmul.msk.f32.gmra.mxu2 %vm91_vm1, %v78_v13  ;;  %673 = vmatmul.msk.f32.gmra.mxu0 %vm91_vm1, %v46_v14 }
  0xce   :  { %v79_v15 = vpop.trf.xlu0  ;;  %v47_v16 = vpop.trf.xlu1 }
  0xcf   :  { %690 = vmatmul.msk.f32.gmra.mxu2 %vm91_vm1, %v79_v15  ;;  %674 = vmatmul.msk.f32.gmra.mxu0 %vm91_vm1, %v47_v16 }
  0xd6   :  { %v80_v17 = vpop.trf.xlu0  ;;  %v48_v18 = vpop.trf.xlu1 }
  0xd7   :  { %691 = vmatmul.msk.f32.gmra.mxu2 %vm91_vm1, %v80_v17  ;;  %675 = vmatmul.msk.f32.gmra.mxu0 %vm91_vm1, %v48_v18 }
  0xde   :  { %v81_v19 = vpop.trf.xlu0  ;;  %v49_v20 = vpop.trf.xlu1 }
  0xdf   :  { %692 = vmatmul.msk.f32.gmra.mxu2 %vm91_vm1, %v81_v19  ;;  %676 = vmatmul.msk.f32.gmra.mxu0 %vm91_vm1, %v49_v20 }
  0xe6   :  { %v82_v21 = vpop.trf.xlu0  ;;  %v50_v22 = vpop.trf.xlu1 }
  0xe7   :  { %693 = vmatmul.msk.f32.gmra.mxu2 %vm91_vm1, %v82_v21  ;;  %677 = vmatmul.msk.f32.gmra.mxu0 %vm91_vm1, %v50_v22 }
  0xee   :  { %v83_v23 = vpop.trf.xlu0  ;;  %v51_v24 = vpop.trf.xlu1 }
  0xef   :  { %694 = vmatmul.msk.f32.gmra.mxu2 %vm91_vm1, %v83_v23  ;;  %678 = vmatmul.msk.f32.gmra.mxu0 %vm91_vm1, %v51_v24 }
  0xf6   :  { %v84_v25 = vpop.trf.xlu0  ;;  %v52_v26 = vpop.trf.xlu1 }
  0xf7   :  { %695 = vmatmul.msk.f32.gmra.mxu2 %vm91_vm1, %v84_v25  ;;  %679 = vmatmul.msk.f32.gmra.mxu0 %vm91_vm1, %v52_v26 }
  0xfe   :  { %v85_v27 = vpop.trf.xlu0  ;;  %v53_v28 = vpop.trf.xlu1 }
  0xff   :  { %696 = vmatmul.msk.f32.gmra.mxu2 %vm91_vm1, %v85_v27  ;;  %680 = vmatmul.msk.f32.gmra.mxu0 %vm91_vm1, %v53_v28 }
 0x106   :  { %v86_v29 = vpop.trf.xlu0  ;;  %v54_v30 = vpop.trf.xlu1 }
 0x107   :  { %697 = vmatmul.msk.f32.gmra.mxu2 %vm91_vm1, %v86_v29  ;;  %681 = vmatmul.msk.f32.gmra.mxu0 %vm91_vm1, %v54_v30 }
 0x10e   :  { %v87_v31 = vpop.trf.xlu0  ;;  %v55_v32 = vpop.trf.xlu1 }
 0x10f   :  { %698 = vmatmul.msk.f32.gmra.mxu2 %vm91_vm1, %v87_v31  ;;  %682 = vmatmul.msk.f32.gmra.mxu0 %vm91_vm1, %v55_v32 }
 0x116   :  { %v88_v33 = vpop.trf.xlu0  ;;  %v56_v34 = vpop.trf.xlu1 }
 0x117   :  { %699 = vmatmul.msk.f32.gmra.mxu2 %vm91_vm1, %v88_v33  ;;  %683 = vmatmul.msk.f32.gmra.mxu0 %vm91_vm1, %v56_v34 }
 0x11e   :  { %v89_v35 = vpop.trf.xlu0  ;;  %v57_v36 = vpop.trf.xlu1 }
 0x11f   :  { %700 = vmatmul.msk.f32.gmra.mxu2 %vm91_vm1, %v89_v35  ;;  %684 = vmatmul.msk.f32.gmra.mxu0 %vm91_vm1, %v57_v36 }
 0x126   :  { %v90_v37 = vpop.trf.xlu0  ;;  %v58_v38 = vpop.trf.xlu1 }
 0x127   :  { %701 = vmatmul.msk.f32.gmra.mxu2 %vm91_vm1, %v90_v37  ;;  %685 = vmatmul.msk.f32.gmra.mxu0 %vm91_vm1, %v58_v38 }
 0x12c   :  { %v209_v40 = vpop.f32.mrf.mxu0 }
 0x12d   :  { %v210_v41 = vadd.f32 %v836_v39, %v209_v40 }
 0x12e   :  { %v393_v42 = vpop.trf.xlu0  ;;  %v361_v43 = vpop.trf.xlu1 }
 0x12f   :  { %720 = vmatmul.msk.f32.vlgmr.msra.gmra.mxu3 %vm91_vm1, %v393_v42  ;;  %305 = vst [vmem:[#allocation2] sm:$0xff] %v210_v41  ;;  %704 = vmatmul.msk.f32.vlgmr.msra.gmra.mxu1 %vm91_vm1, %v361_v43 }
 0x132   :  { %v257_v44 = vpop.f32.mrf.mxu2 }
 0x133   :  { %v258_v45 = vadd.f32 %v836_v39, %v257_v44 }
 0x134   :  { %v212_v46 = vpop.f32.mrf.mxu0 }
 0x135   :  { %321 = vst [vmem:[#allocation2 + $0x80] sm:$0xff] %v258_v45  ;;  %v213_v47 = vadd.f32 %v836_v39, %v212_v46 }
 0x136   :  { %v394_v48 = vpop.trf.xlu0  ;;  %v362_v49 = vpop.trf.xlu1 }
 0x137   :  { %721 = vmatmul.msk.f32.gmra.mxu3 %vm91_vm1, %v394_v48  ;;  %306 = vst [vmem:[#allocation2 + $0x8] sm:$0xff] %v213_v47  ;;  %705 = vmatmul.msk.f32.gmra.mxu1 %vm91_vm1, %v362_v49 }
 0x13a   :  { %v260_v50 = vpop.f32.mrf.mxu2 }
 0x13b   :  { %v261_v51 = vadd.f32 %v836_v39, %v260_v50 }
 0x13c   :  { %v215_v52 = vpop.f32.mrf.mxu0 }
 0x13d   :  { %322 = vst [vmem:[#allocation2 + $0x88] sm:$0xff] %v261_v51  ;;  %v216_v53 = vadd.f32 %v836_v39, %v215_v52 }
 0x13e   :  { %v395_v54 = vpop.trf.xlu0  ;;  %v363_v55 = vpop.trf.xlu1 }
 0x13f   :  { %722 = vmatmul.msk.f32.gmra.mxu3 %vm91_vm1, %v395_v54  ;;  %307 = vst [vmem:[#allocation2 + $0x10] sm:$0xff] %v216_v53  ;;  %706 = vmatmul.msk.f32.gmra.mxu1 %vm91_vm1, %v363_v55 }
 0x142   :  { %v263_v56 = vpop.f32.mrf.mxu2 }
 0x143   :  { %v264_v57 = vadd.f32 %v836_v39, %v263_v56 }
 0x144   :  { %v218_v58 = vpop.f32.mrf.mxu0 }
 0x145   :  { %323 = vst [vmem:[#allocation2 + $0x90] sm:$0xff] %v264_v57  ;;  %v219_v59 = vadd.f32 %v836_v39, %v218_v58 }
 0x146   :  { %v396_v60 = vpop.trf.xlu0  ;;  %v364_v61 = vpop.trf.xlu1 }
 0x147   :  { %723 = vmatmul.msk.f32.gmra.mxu3 %vm91_vm1, %v396_v60  ;;  %308 = vst [vmem:[#allocation2 + $0x18] sm:$0xff] %v219_v59  ;;  %707 = vmatmul.msk.f32.gmra.mxu1 %vm91_vm1, %v364_v61 }
 0x14a   :  { %v266_v62 = vpop.f32.mrf.mxu2 }
 0x14b   :  { %v267_v63 = vadd.f32 %v836_v39, %v266_v62 }
 0x14c   :  { %v221_v0 = vpop.f32.mrf.mxu0 }
 0x14d   :  { %324 = vst [vmem:[#allocation2 + $0x98] sm:$0xff] %v267_v63  ;;  %v222_v1 = vadd.f32 %v836_v39, %v221_v0 }
 0x14e   :  { %v397_v2 = vpop.trf.xlu0  ;;  %v365_v3 = vpop.trf.xlu1 }
 0x14f   :  { %724 = vmatmul.msk.f32.gmra.mxu3 %vm91_vm1, %v397_v2  ;;  %309 = vst [vmem:[#allocation2 + $0x20] sm:$0xff] %v222_v1  ;;  %708 = vmatmul.msk.f32.gmra.mxu1 %vm91_vm1, %v365_v3 }
 0x152   :  { %v269_v4 = vpop.f32.mrf.mxu2 }
 0x153   :  { %v270_v5 = vadd.f32 %v836_v39, %v269_v4 }
 0x154   :  { %v224_v6 = vpop.f32.mrf.mxu0 }
 0x155   :  { %325 = vst [vmem:[#allocation2 + $0xa0] sm:$0xff] %v270_v5  ;;  %v225_v7 = vadd.f32 %v836_v39, %v224_v6 }
 0x156   :  { %v398_v8 = vpop.trf.xlu0  ;;  %v366_v9 = vpop.trf.xlu1 }
 0x157   :  { %725 = vmatmul.msk.f32.gmra.mxu3 %vm91_vm1, %v398_v8  ;;  %310 = vst [vmem:[#allocation2 + $0x28] sm:$0xff] %v225_v7  ;;  %709 = vmatmul.msk.f32.gmra.mxu1 %vm91_vm1, %v366_v9 }
 0x15a   :  { %v272_v10 = vpop.f32.mrf.mxu2 }
 0x15b   :  { %v273_v11 = vadd.f32 %v836_v39, %v272_v10 }
 0x15c   :  { %v227_v12 = vpop.f32.mrf.mxu0 }
 0x15d   :  { %326 = vst [vmem:[#allocation2 + $0xa8] sm:$0xff] %v273_v11  ;;  %v228_v13 = vadd.f32 %v836_v39, %v227_v12 }
 0x15e   :  { %v399_v14 = vpop.trf.xlu0  ;;  %v367_v15 = vpop.trf.xlu1 }
 0x15f   :  { %726 = vmatmul.msk.f32.gmra.mxu3 %vm91_vm1, %v399_v14  ;;  %311 = vst [vmem:[#allocation2 + $0x30] sm:$0xff] %v228_v13  ;;  %710 = vmatmul.msk.f32.gmra.mxu1 %vm91_vm1, %v367_v15 }
 0x162   :  { %v275_v16 = vpop.f32.mrf.mxu2 }
 0x163   :  { %v276_v17 = vadd.f32 %v836_v39, %v275_v16 }
 0x164   :  { %v230_v18 = vpop.f32.mrf.mxu0 }
 0x165   :  { %327 = vst [vmem:[#allocation2 + $0xb0] sm:$0xff] %v276_v17  ;;  %v231_v19 = vadd.f32 %v836_v39, %v230_v18 }
 0x166   :  { %v400_v20 = vpop.trf.xlu0  ;;  %v368_v21 = vpop.trf.xlu1 }
 0x167   :  { %727 = vmatmul.msk.f32.gmra.mxu3 %vm91_vm1, %v400_v20  ;;  %312 = vst [vmem:[#allocation2 + $0x38] sm:$0xff] %v231_v19  ;;  %711 = vmatmul.msk.f32.gmra.mxu1 %vm91_vm1, %v368_v21 }
 0x16a   :  { %v278_v22 = vpop.f32.mrf.mxu2 }
 0x16b   :  { %v279_v23 = vadd.f32 %v836_v39, %v278_v22 }
 0x16c   :  { %v233_v24 = vpop.f32.mrf.mxu0 }
 0x16d   :  { %328 = vst [vmem:[#allocation2 + $0xb8] sm:$0xff] %v279_v23  ;;  %v234_v25 = vadd.f32 %v836_v39, %v233_v24 }
 0x16e   :  { %v401_v26 = vpop.trf.xlu0  ;;  %v369_v27 = vpop.trf.xlu1 }
 0x16f   :  { %728 = vmatmul.msk.f32.gmra.mxu3 %vm91_vm1, %v401_v26  ;;  %313 = vst [vmem:[#allocation2 + $0x40] sm:$0xff] %v234_v25  ;;  %712 = vmatmul.msk.f32.gmra.mxu1 %vm91_vm1, %v369_v27 }
 0x172   :  { %v281_v28 = vpop.f32.mrf.mxu2 }
 0x173   :  { %v282_v29 = vadd.f32 %v836_v39, %v281_v28 }
 0x174   :  { %v236_v30 = vpop.f32.mrf.mxu0 }
 0x175   :  { %329 = vst [vmem:[#allocation2 + $0xc0] sm:$0xff] %v282_v29  ;;  %v237_v31 = vadd.f32 %v836_v39, %v236_v30 }
 0x176   :  { %v402_v32 = vpop.trf.xlu0  ;;  %v370_v33 = vpop.trf.xlu1 }
 0x177   :  { %729 = vmatmul.msk.f32.gmra.mxu3 %vm91_vm1, %v402_v32  ;;  %314 = vst [vmem:[#allocation2 + $0x48] sm:$0xff] %v237_v31  ;;  %713 = vmatmul.msk.f32.gmra.mxu1 %vm91_vm1, %v370_v33 }
 0x17a   :  { %v284_v34 = vpop.f32.mrf.mxu2 }
 0x17b   :  { %v285_v35 = vadd.f32 %v836_v39, %v284_v34 }
 0x17c   :  { %v239_v36 = vpop.f32.mrf.mxu0 }
 0x17d   :  { %330 = vst [vmem:[#allocation2 + $0xc8] sm:$0xff] %v285_v35  ;;  %v240_v37 = vadd.f32 %v836_v39, %v239_v36 }
 0x17e   :  { %v403_v38 = vpop.trf.xlu0  ;;  %v371_v40 = vpop.trf.xlu1 }
 0x17f   :  { %730 = vmatmul.msk.f32.gmra.mxu3 %vm91_vm1, %v403_v38  ;;  %315 = vst [vmem:[#allocation2 + $0x50] sm:$0xff] %v240_v37  ;;  %714 = vmatmul.msk.f32.gmra.mxu1 %vm91_vm1, %v371_v40 }
 0x182   :  { %v287_v41 = vpop.f32.mrf.mxu2 }
 0x183   :  { %v288_v42 = vadd.f32 %v836_v39, %v287_v41 }
 0x184   :  { %v242_v43 = vpop.f32.mrf.mxu0 }
 0x185   :  { %331 = vst [vmem:[#allocation2 + $0xd0] sm:$0xff] %v288_v42  ;;  %v243_v44 = vadd.f32 %v836_v39, %v242_v43 }
 0x186   :  { %v404_v45 = vpop.trf.xlu0  ;;  %v372_v46 = vpop.trf.xlu1 }
 0x187   :  { %731 = vmatmul.msk.f32.gmra.mxu3 %vm91_vm1, %v404_v45  ;;  %316 = vst [vmem:[#allocation2 + $0x58] sm:$0xff] %v243_v44  ;;  %715 = vmatmul.msk.f32.gmra.mxu1 %vm91_vm1, %v372_v46 }
 0x18a   :  { %v290_v47 = vpop.f32.mrf.mxu2 }
 0x18b   :  { %v291_v48 = vadd.f32 %v836_v39, %v290_v47 }
 0x18c   :  { %v245_v49 = vpop.f32.mrf.mxu0 }
 0x18d   :  { %332 = vst [vmem:[#allocation2 + $0xd8] sm:$0xff] %v291_v48  ;;  %v246_v50 = vadd.f32 %v836_v39, %v245_v49 }
 0x18e   :  { %v405_v51 = vpop.trf.xlu0  ;;  %v373_v52 = vpop.trf.xlu1 }
 0x18f   :  { %732 = vmatmul.msk.f32.gmra.mxu3 %vm91_vm1, %v405_v51  ;;  %317 = vst [vmem:[#allocation2 + $0x60] sm:$0xff] %v246_v50  ;;  %716 = vmatmul.msk.f32.gmra.mxu1 %vm91_vm1, %v373_v52 }
 0x192   :  { %v293_v53 = vpop.f32.mrf.mxu2 }
 0x193   :  { %v294_v54 = vadd.f32 %v836_v39, %v293_v53 }
 0x194   :  { %v248_v55 = vpop.f32.mrf.mxu0 }
 0x195   :  { %333 = vst [vmem:[#allocation2 + $0xe0] sm:$0xff] %v294_v54  ;;  %v249_v56 = vadd.f32 %v836_v39, %v248_v55 }
 0x196   :  { %v406_v57 = vpop.trf.xlu0  ;;  %v374_v58 = vpop.trf.xlu1 }
 0x197   :  { %733 = vmatmul.msk.f32.gmra.mxu3 %vm91_vm1, %v406_v57  ;;  %318 = vst [vmem:[#allocation2 + $0x68] sm:$0xff] %v249_v56  ;;  %717 = vmatmul.msk.f32.gmra.mxu1 %vm91_vm1, %v374_v58 }
 0x19a   :  { %v296_v59 = vpop.f32.mrf.mxu2 }
 0x19b   :  { %v297_v60 = vadd.f32 %v836_v39, %v296_v59 }
 0x19c   :  { %v251_v61 = vpop.f32.mrf.mxu0 }
 0x19d   :  { %334 = vst [vmem:[#allocation2 + $0xe8] sm:$0xff] %v297_v60  ;;  %v252_v62 = vadd.f32 %v836_v39, %v251_v61 }
 0x19e   :  { %v407_v63 = vpop.trf.xlu0  ;;  %v375_v0 = vpop.trf.xlu1 }
 0x19f   :  { %734 = vmatmul.msk.f32.gmra.mxu3 %vm91_vm1, %v407_v63  ;;  %319 = vst [vmem:[#allocation2 + $0x70] sm:$0xff] %v252_v62  ;;  %718 = vmatmul.msk.f32.gmra.mxu1 %vm91_vm1, %v375_v0 }
 0x1a2   :  { %v299_v1 = vpop.f32.mrf.mxu2 }
 0x1a3   :  { %v300_v2 = vadd.f32 %v836_v39, %v299_v1 }
 0x1a4   :  { %v254_v3 = vpop.f32.mrf.mxu0 }
 0x1a5   :  { %335 = vst [vmem:[#allocation2 + $0xf0] sm:$0xff] %v300_v2  ;;  %v255_v4 = vadd.f32 %v836_v39, %v254_v3 }
 0x1a6   :  { %v408_v5 = vpop.trf.xlu0  ;;  %v376_v6 = vpop.trf.xlu1 }
 0x1a7   :  { %735 = vmatmul.msk.f32.gmra.mxu3 %vm91_vm1, %v408_v5  ;;  %320 = vst [vmem:[#allocation2 + $0x78] sm:$0xff] %v255_v4  ;;  %719 = vmatmul.msk.f32.gmra.mxu1 %vm91_vm1, %v376_v6 }
 0x1aa   :  { %v302_v7 = vpop.f32.mrf.mxu2 }
 0x1ab   :  { %v303_v8 = vadd.f32 %v836_v39, %v302_v7 }
 0x1ac   :  { %v522_v9 = vpop.f32.mrf.mxu1 }
 0x1ad   :  { %336 = vst [vmem:[#allocation2 + $0xf8] sm:$0xff] %v303_v8  ;;  %v523_v10 = vadd.f32 %v836_v39, %v522_v9 }
 0x1af   :  { %619 = vst [vmem:[#allocation2 + $0x100] sm:$0xff] %v523_v10 }
 0x1b2   :  { %v570_v11 = vpop.f32.mrf.mxu3 }
 0x1b3   :  { %v571_v12 = vadd.f32 %v836_v39, %v570_v11 }
 0x1b4   :  { %v525_v13 = vpop.f32.mrf.mxu1 }
 0x1b5   :  { %635 = vst [vmem:[#allocation2 + $0x180] sm:$0xff] %v571_v12  ;;  %v526_v14 = vadd.f32 %v836_v39, %v525_v13 }
 0x1b7   :  { %620 = vst [vmem:[#allocation2 + $0x108] sm:$0xff] %v526_v14 }
 0x1ba   :  { %v573_v15 = vpop.f32.mrf.mxu3 }
 0x1bb   :  { %v574_v16 = vadd.f32 %v836_v39, %v573_v15 }
 0x1bc   :  { %v528_v17 = vpop.f32.mrf.mxu1 }
 0x1bd   :  { %636 = vst [vmem:[#allocation2 + $0x188] sm:$0xff] %v574_v16  ;;  %v529_v18 = vadd.f32 %v836_v39, %v528_v17 }
 0x1bf   :  { %621 = vst [vmem:[#allocation2 + $0x110] sm:$0xff] %v529_v18 }
 0x1c2   :  { %v576_v19 = vpop.f32.mrf.mxu3 }
 0x1c3   :  { %v577_v20 = vadd.f32 %v836_v39, %v576_v19 }
 0x1c4   :  { %v531_v21 = vpop.f32.mrf.mxu1 }
 0x1c5   :  { %637 = vst [vmem:[#allocation2 + $0x190] sm:$0xff] %v577_v20  ;;  %v532_v22 = vadd.f32 %v836_v39, %v531_v21 }
 0x1c7   :  { %622 = vst [vmem:[#allocation2 + $0x118] sm:$0xff] %v532_v22 }
 0x1ca   :  { %v579_v23 = vpop.f32.mrf.mxu3 }
 0x1cb   :  { %v580_v24 = vadd.f32 %v836_v39, %v579_v23 }
 0x1cc   :  { %v534_v25 = vpop.f32.mrf.mxu1 }
 0x1cd   :  { %638 = vst [vmem:[#allocation2 + $0x198] sm:$0xff] %v580_v24  ;;  %v535_v26 = vadd.f32 %v836_v39, %v534_v25 }
 0x1cf   :  { %623 = vst [vmem:[#allocation2 + $0x120] sm:$0xff] %v535_v26 }
 0x1d2   :  { %v582_v27 = vpop.f32.mrf.mxu3 }
 0x1d3   :  { %v583_v28 = vadd.f32 %v836_v39, %v582_v27 }
 0x1d4   :  { %v537_v29 = vpop.f32.mrf.mxu1 }
 0x1d5   :  { %639 = vst [vmem:[#allocation2 + $0x1a0] sm:$0xff] %v583_v28  ;;  %v538_v30 = vadd.f32 %v836_v39, %v537_v29 }
 0x1d7   :  { %624 = vst [vmem:[#allocation2 + $0x128] sm:$0xff] %v538_v30 }
 0x1da   :  { %v585_v31 = vpop.f32.mrf.mxu3 }
 0x1db   :  { %v586_v32 = vadd.f32 %v836_v39, %v585_v31 }
 0x1dc   :  { %v540_v33 = vpop.f32.mrf.mxu1 }
 0x1dd   :  { %640 = vst [vmem:[#allocation2 + $0x1a8] sm:$0xff] %v586_v32  ;;  %v541_v34 = vadd.f32 %v836_v39, %v540_v33 }
 0x1df   :  { %625 = vst [vmem:[#allocation2 + $0x130] sm:$0xff] %v541_v34 }
 0x1e2   :  { %v588_v35 = vpop.f32.mrf.mxu3 }
 0x1e3   :  { %v589_v36 = vadd.f32 %v836_v39, %v588_v35 }
 0x1e4   :  { %v543_v37 = vpop.f32.mrf.mxu1 }
 0x1e5   :  { %641 = vst [vmem:[#allocation2 + $0x1b0] sm:$0xff] %v589_v36  ;;  %v544_v38 = vadd.f32 %v836_v39, %v543_v37 }
 0x1e7   :  { %626 = vst [vmem:[#allocation2 + $0x138] sm:$0xff] %v544_v38 }
 0x1ea   :  { %v591_v40 = vpop.f32.mrf.mxu3 }
 0x1eb   :  { %v592_v41 = vadd.f32 %v836_v39, %v591_v40 }
 0x1ec   :  { %v546_v42 = vpop.f32.mrf.mxu1 }
 0x1ed   :  { %642 = vst [vmem:[#allocation2 + $0x1b8] sm:$0xff] %v592_v41  ;;  %v547_v43 = vadd.f32 %v836_v39, %v546_v42 }
 0x1ef   :  { %627 = vst [vmem:[#allocation2 + $0x140] sm:$0xff] %v547_v43 }
 0x1f2   :  { %v594_v44 = vpop.f32.mrf.mxu3 }
 0x1f3   :  { %v595_v45 = vadd.f32 %v836_v39, %v594_v44 }
 0x1f4   :  { %v549_v46 = vpop.f32.mrf.mxu1 }
 0x1f5   :  { %643 = vst [vmem:[#allocation2 + $0x1c0] sm:$0xff] %v595_v45  ;;  %v550_v47 = vadd.f32 %v836_v39, %v549_v46 }
 0x1f7   :  { %628 = vst [vmem:[#allocation2 + $0x148] sm:$0xff] %v550_v47 }
 0x1fa   :  { %v597_v48 = vpop.f32.mrf.mxu3 }
 0x1fb   :  { %v598_v49 = vadd.f32 %v836_v39, %v597_v48 }
 0x1fc   :  { %v552_v50 = vpop.f32.mrf.mxu1 }
 0x1fd   :  { %644 = vst [vmem:[#allocation2 + $0x1c8] sm:$0xff] %v598_v49  ;;  %v553_v51 = vadd.f32 %v836_v39, %v552_v50 }
 0x1ff   :  { %629 = vst [vmem:[#allocation2 + $0x150] sm:$0xff] %v553_v51 }
 0x202   :  { %v600_v52 = vpop.f32.mrf.mxu3 }
 0x203   :  { %v601_v53 = vadd.f32 %v836_v39, %v600_v52 }
 0x204   :  { %v555_v54 = vpop.f32.mrf.mxu1 }
 0x205   :  { %645 = vst [vmem:[#allocation2 + $0x1d0] sm:$0xff] %v601_v53  ;;  %v556_v55 = vadd.f32 %v836_v39, %v555_v54 }
 0x207   :  { %630 = vst [vmem:[#allocation2 + $0x158] sm:$0xff] %v556_v55 }
 0x20a   :  { %v603_v56 = vpop.f32.mrf.mxu3 }
 0x20b   :  { %v604_v57 = vadd.f32 %v836_v39, %v603_v56 }
 0x20c   :  { %v558_v58 = vpop.f32.mrf.mxu1 }
 0x20d   :  { %646 = vst [vmem:[#allocation2 + $0x1d8] sm:$0xff] %v604_v57  ;;  %v559_v59 = vadd.f32 %v836_v39, %v558_v58 }
 0x20f   :  { %631 = vst [vmem:[#allocation2 + $0x160] sm:$0xff] %v559_v59 }
 0x212   :  { %v606_v60 = vpop.f32.mrf.mxu3 }
 0x213   :  { %v607_v61 = vadd.f32 %v836_v39, %v606_v60 }
 0x214   :  { %v561_v62 = vpop.f32.mrf.mxu1 }
 0x215   :  { %647 = vst [vmem:[#allocation2 + $0x1e0] sm:$0xff] %v607_v61  ;;  %v562_v63 = vadd.f32 %v836_v39, %v561_v62 }
 0x217   :  { %632 = vst [vmem:[#allocation2 + $0x168] sm:$0xff] %v562_v63 }
 0x21a   :  { %v609_v0 = vpop.f32.mrf.mxu3 }
 0x21b   :  { %v610_v1 = vadd.f32 %v836_v39, %v609_v0 }
 0x21c   :  { %v564_v2 = vpop.f32.mrf.mxu1 }
 0x21d   :  { %648 = vst [vmem:[#allocation2 + $0x1e8] sm:$0xff] %v610_v1  ;;  %v565_v3 = vadd.f32 %v836_v39, %v564_v2 }
 0x21f   :  { %633 = vst [vmem:[#allocation2 + $0x170] sm:$0xff] %v565_v3 }
 0x222   :  { %v612_v4 = vpop.f32.mrf.mxu3 }
 0x223   :  { %v613_v5 = vadd.f32 %v836_v39, %v612_v4 }
 0x224   :  { %v567_v6 = vpop.f32.mrf.mxu1 }
 0x225   :  { %649 = vst [vmem:[#allocation2 + $0x1f0] sm:$0xff] %v613_v5  ;;  %v568_v7 = vadd.f32 %v836_v39, %v567_v6 }
 0x227   :  { %634 = vst [vmem:[#allocation2 + $0x178] sm:$0xff] %v568_v7 }
 0x22a   :  { %v615_v8 = vpop.f32.mrf.mxu3 }
 0x22b   :  { %v616_v9 = vadd.f32 %v836_v39, %v615_v8 }
 0x22d   :  { %650 = vst [vmem:[#allocation2 + $0x1f8] sm:$0xff] %v616_v9 }
 0x22e   :  { %663 = dma.vmem_to_hbm [thread:$0]  %s656_s18, 8192, %s658_s21, [#allocation3], %s770_s22, %s770_s22, %s771_s23  }
 0x22f   :  { %767 = dma.done.wait [#allocation3], 8192  }
 0x230   :  { %768 = vsyncadd [#allocation3], 4294959104 }
 0x231   :  { %668 = vsyncpa [#allocation3], 1 }

</bundles_post_ra>
